<compile_context>
chip_gen: v6e
topology: v6e:2x2x1
jax: 0.10.0
libtpu: 0.0.40
codegen_flags: <defaults>
</compile_context>

<pallas_src>
import functools
import math

import jax
import jax.numpy as jnp
from jax.experimental import pallas as pl
from jax.experimental.pallas import tpu as pltpu

_SQRT2 = math.sqrt(2.0)
_SMALL_N = 1 << 20                 # below this, fused XLA elementwise is already at roofline
_TARGET_BLOCK_BYTES = 4 << 20      # ~4 MiB per block: amortizes per-step overhead on all gens
_VMEM_LIMIT_BYTES = 48 << 20       # (in+out) x 2-deep buffers of 4 MiB = 16 MiB << limit < v7x 64 MiB


def _scaled_leaky_relu_kernel(x_ref, o_ref, *, pos_scale, neg_scale, compute_dtype):
    """o = x * (pos_scale if x >= 0 else neg_scale), elementwise on one tile."""
    x = x_ref[...].astype(compute_dtype)           # no-op cast when dtypes match
    pos = jnp.asarray(pos_scale, dtype=compute_dtype)
    neg = jnp.asarray(neg_scale, dtype=compute_dtype)
    o_ref[...] = (x * jnp.where(x >= 0, pos, neg)).astype(o_ref.dtype)


def _fused_math(x, negative_slope):
    """Pure-JAX expression matching the PyTorch forward (single fused XLA op)."""
    return jnp.where(x >= 0, x, x * negative_slope) * jnp.asarray(_SQRT2, x.dtype)


def scaled_leaky_relu(x, negative_slope=0.2, *, block_rows=None, min_kernel_size=_SMALL_N):
    """ScaledLeakyReLU forward: leaky_relu(x, negative_slope) * sqrt(2).

    Works for any shape/dtype. Large inputs whose element count is a multiple of
    128 go through a tiled Pallas TPU kernel over a lane-dense 2D view of the
    flattened input (free reshape, exactly 1 HBM read + 1 HBM write). Small or
    128-ragged inputs use the fused XLA expression, which is already optimal and
    avoids any pad / slice / concat extra HBM passes.
    """
    orig_shape = x.shape
    dtype = x.dtype
    n = x.size

    # Small-input fast path: launch/grid overhead would dominate.
    if n == 0 or n < min_kernel_size:
        return _fused_math(x, negative_slope)

    # Largest lane-dense column count that divides n exactly (free 2D reshape).
    cols = 0
    for c in (1024, 2048, 4096, 512, 256, 128):
        if n % c == 0:
            cols = c
            break

    if cols == 0:
        # Not a multiple of 128: a padded copy (or bulk+tail reassembly) would add
        # full-array HBM passes; the fused XLA op is already 1 read + 1 write.
        return _fused_math(x, negative_slope)

    itemsize = jnp.dtype(dtype).itemsize
    rows = n // cols

    # Block rows: target ~4 MiB per block, multiple of 8; single full-extent
    # block when the array is smaller than one block.
    if block_rows is None:
        br = _TARGET_BLOCK_BYTES // (cols * itemsize)
    else:
        br = int(block_rows)
    br = max(8, (br // 8) * 8)
    if br >= rows:
        br = rows                       # block dim == full array dim (always legal)
    grid = pl.cdiv(rows, br)            # partial last block handled by Pallas masking

    # Fold slope and sqrt(2) into two constants; bf16 computes natively in bf16.
    pos_scale = _SQRT2
    neg_scale = _SQRT2 * float(negative_slope)
    if dtype in (jnp.dtype(jnp.float32), jnp.dtype(jnp.bfloat16)):
        compute_dtype = dtype
    else:
        compute_dtype = jnp.float32

    kernel = functools.partial(
        _scaled_leaky_relu_kernel,
        pos_scale=pos_scale,
        neg_scale=neg_scale,
        compute_dtype=compute_dtype,
    )

    x2 = x.reshape(rows, cols)          # free reshape of a contiguous input

    out2 = pl.pallas_call(
        kernel,
        out_shape=jax.ShapeDtypeStruct((rows, cols), dtype),
        grid_spec=pl.GridSpec(
            grid=(grid,),
            in_specs=[pl.BlockSpec((br, cols), lambda i: (i, 0))],
            out_specs=pl.BlockSpec((br, cols), lambda i: (i, 0)),
        ),
        compiler_params=pltpu.CompilerParams(
            dimension_semantics=("parallel",),
            vmem_limit_bytes=_VMEM_LIMIT_BYTES,
        ),
        cost_estimate=pl.CostEstimate(
            flops=2 * n,
            transcendentals=0,
            bytes_accessed=2 * n * itemsize,
        ),
    )(x2)

    return out2.reshape(orig_shape)


def scaled_leaky_relu_reference(x, negative_slope=0.2):
    """Pure-JAX reference matching the PyTorch forward exactly."""
    return jnp.where(x >= 0, x, x * negative_slope) * math.sqrt(2.0)


if __name__ == "__main__":
    key = jax.random.PRNGKey(0)
    k0, k1, k2, k3 = jax.random.split(key, 4)
    slope = 0.2

    # 1) Module-sized NCHW input — small, so the wrapper takes the fused fast path.
    x = jax.random.normal(k0, (2, 4, 16, 16), dtype=jnp.float32)
    out = jax.block_until_ready(scaled_leaky_relu(x, slope))
    ref = scaled_leaky_relu_reference(x, slope)
    assert out.shape == x.shape and out.dtype == x.dtype
    assert jnp.allclose(out, ref, atol=1e-6, rtol=1e-5), "fast-path output mismatch"

    # 2) Ragged shape (size not a multiple of 128) — fused fallback path.
    y = jax.random.normal(k1, (3, 5, 7, 11), dtype=jnp.float32)
    out_y = jax.block_until_ready(scaled_leaky_relu(y, slope))
    assert out_y.shape == y.shape
    assert jnp.allclose(out_y, scaled_leaky_relu_reference(y, slope), atol=1e-6, rtol=1e-5), \
        "ragged output mismatch"

    # 3) Force the Pallas kernel (single full-extent block) on the module-sized input.
    out_k = jax.block_until_ready(scaled_leaky_relu(x, slope, min_kernel_size=0))
    assert out_k.shape == x.shape and out_k.dtype == x.dtype
    assert jnp.allclose(out_k, ref, atol=1e-6, rtol=1e-5), "kernel (single block) mismatch"

    # 4) Force the kernel with a multi-block grid (rows=128, blocks of (32, 1024), grid=4).
    z = jax.random.normal(k2, (8, 16, 32, 32), dtype=jnp.float32)
    out_z = jax.block_until_ready(
        scaled_leaky_relu(z, slope, block_rows=32, min_kernel_size=0))
    assert out_z.shape == z.shape
    assert jnp.allclose(out_z, scaled_leaky_relu_reference(z, slope), atol=1e-6, rtol=1e-5), \
        "kernel (multi-block) mismatch"

    # 5) bf16 input — kernel computes natively in bf16 (differs from an f32
    #    reference by <= ~1 bf16 ulp due to rounding order).
    zb = jax.random.normal(k3, (8, 16, 32, 32), dtype=jnp.bfloat16)
    out_b = jax.block_until_ready(
        scaled_leaky_relu(zb, slope, block_rows=32, min_kernel_size=0))
    zf = zb.astype(jnp.float32)
    ref_b = zf * jnp.where(zf >= 0, _SQRT2, _SQRT2 * slope)
    assert out_b.dtype == jnp.bfloat16 and out_b.shape == zb.shape
    assert jnp.allclose(out_b.astype(jnp.float32), ref_b, atol=3e-2, rtol=3e-2), \
        "bf16 kernel mismatch"

    print("KERNEL_OK")
</pallas_src>

<mosaic_0001>
module attributes {stable_mosaic.version = 11 : i64} {
  func.func @_scaled_leaky_relu_kernel(%arg0: i32, %arg1: memref<2x1024xf32, #tpu.memory_space<vmem>>, %arg2: memref<2x1024xf32, #tpu.memory_space<vmem>>) attributes {dimension_semantics = [#tpu.dimension_semantics<parallel>], iteration_bounds = array<i64: 1>, scalar_prefetch = 0 : i64, scratch_operands = 0 : i64, tpu.core_type = #tpu.core_type<tc>, window_params = [{transform_indices = @transform_0, window_bounds = array<i64: 2, 1024>}, {transform_indices = @transform_1, window_bounds = array<i64: 2, 1024>}]} {
    %c0 = arith.constant 0 : index
    %c0_0 = arith.constant 0 : index
    %0 = vector.load %arg1[%c0, %c0_0] : memref<2x1024xf32, #tpu.memory_space<vmem>>, vector<2x1024xf32>
    %cst = arith.constant 0.000000e+00 : f32
    %1 = vector.broadcast %cst : f32 to vector<2x1024xf32>
    %2 = arith.cmpf oge, %0, %1 : vector<2x1024xf32>
    %cst_1 = arith.constant 1.41421354 : f32
    %cst_2 = arith.constant 0.282842726 : f32
    %3 = vector.broadcast %cst_1 : f32 to vector<2x1024xf32>
    %4 = vector.broadcast %cst_2 : f32 to vector<2x1024xf32>
    %5 = arith.select %2, %3, %4 : vector<2x1024xi1>, vector<2x1024xf32>
    %6 = arith.mulf %0, %5 : vector<2x1024xf32>
    %c0_3 = arith.constant 0 : index
    %c0_4 = arith.constant 0 : index
    %7 = vector.load %arg2[%c0_3, %c0_4] : memref<2x1024xf32, #tpu.memory_space<vmem>>, vector<2x1024xf32>
    tpu.vector_store %arg2[%c0_3, %c0_4], %6 {strides = array<i32>} : memref<2x1024xf32, #tpu.memory_space<vmem>>, vector<2x1024xf32>,
    return
  }
  func.func @transform_0(%arg0: i32) -> (i32, i32) {
    %c0_i32 = arith.constant 0 : i32
    %c0_i32_0 = arith.constant 0 : i32
    return %arg0, %c0_i32 : i32, i32
  }
  func.func @transform_1(%arg0: i32) -> (i32, i32) {
    %c0_i32 = arith.constant 0 : i32
    %c0_i32_0 = arith.constant 0 : i32
    return %arg0, %c0_i32 : i32, i32
  }
}

</mosaic_0001>

<bundles_post_ra>
// kernel: tpu_custom_call.1
= control target key start
LH: loop header
LB: loop body
LE: loop exit
PB: predicated region body
PF: predicated region fallthrough
CT: control target
= control target key end

     0   :  { %6 = vsyncpa [#allocation3], 0  ;;  %s112_s0 = inlined_call_operand.hbm [shape: f32[2,1024], index: 0, kind: input, shape index: {}]   ;;  %s113_s1 = inlined_call_operand.hbm [shape: f32[2,1024], index: 1, kind: output, shape index: {}]  }
   0x1   :  { %7 = vsyncpa [#allocation4], 0  ;;  %s93_s6 = smov [#allocation2]  }
   0x2   :  { %s14_s7 = sshll.u32 %s93_s6, 4  ;;  %s15_s7 = int_to_ptr.vmem [resolvable:$true] %s14_s7 }
   0x3   :  { %s57_s8 = scalar_lea.vmem %s15_s7, 256  ;;  %p62_p1 = scmp.lt.s32.totalorder %s15_s7, %s15_s7 }
   0x4   :  { %p58_p0 = scmp.ne.s32.totalorder %s15_s7, %s57_s8  ;;  %p63_p2 = scmp.lt.s32.totalorder %s57_s8, %s57_s8 }
   0x6   :  { %p64_p3 = por %p63_p2, %p62_p1 }
   0x8   :  { %p65_p4 = pnand %p64_p3, %p58_p0 }
   0xa   :  { %68 = shalt.err (!%p65_p4)
}
   0xb   :  { %17 = dma.hbm_to_vmem [thread:$0]  %s112_s0, 256, %s15_s7, [#allocation3]  }
   0xc   :  { %89 = dma.done.wait [#allocation3], 256  }
   0xd   :  { %90 = vsyncadd [#allocation3], 4294967040  ;;  %v21_v0 = vld [vmem:[#allocation2] sm:$0xff]  ;;  %v22_v1 = vld [vmem:[#allocation2 + $0x8] sm:$0xff]  ;;  %s94_s11 = smov [#allocation5]  }
   0xe   :  { %s37_s12 = sshll.u32 %s94_s11, 4  ;;  %vm23_vm0 = vcmp.ge.f32.partialorder %v21_v0, 0.0  ;;  %vm24_vm1 = vcmp.ge.f32.partialorder %v22_v1, 0.0  ;;  %v95_v2 = vmov 0.28284273   ;;  %s38_s12 = int_to_ptr.vmem [resolvable:$true] %s37_s12 }
   0xf   :  { %v25_v3 = vsel %vm23_vm0, 1.4142135, %v95_v2  ;;  %v26_v4 = vsel %vm24_vm1, 1.4142135, %v95_v2  ;;  %s69_s13 = scalar_lea.vmem %s38_s12, 256  ;;  %p74_p6 = scmp.lt.s32.totalorder %s38_s12, %s38_s12 }
  0x10   :  { %v27_v5 = vmul.f32 %v25_v3, %v21_v0  ;;  %v28_v6 = vmul.f32 %v26_v4, %v22_v1  ;;  %p70_p5 = scmp.ne.s32.totalorder %s38_s12, %s69_s13  ;;  %p75_p7 = scmp.lt.s32.totalorder %s69_s13, %s69_s13 }
  0x12   :  { %29 = vst [vmem:[#allocation5] sm:$0xff] %v27_v5  ;;  %30 = vst [vmem:[#allocation5 + $0x8] sm:$0xff] %v28_v6  ;;  %p76_p8 = por %p75_p7, %p74_p6 }
  0x14   :  { %p77_p9 = pnand %p76_p8, %p70_p5 }
  0x16   :  { %80 = shalt.err (!%p77_p9)
}
  0x17   :  { %40 = dma.vmem_to_hbm [thread:$0]  %s38_s12, 256, %s113_s1, [#allocation4]  }
  0x18   :  { %91 = dma.done.wait [#allocation4], 256  }
  0x19   :  { %92 = vsyncadd [#allocation4], 4294967040 }
  0x1a   :  { %44 = vsyncpa [#allocation3], 1 }
  0x1b   :  { %45 = vsyncpa [#allocation4], 1 }

</bundles_post_ra>
